<compile_context>
chip_gen: v7x
topology: tpu7x:2x2x1
jax: 0.10.0
libtpu: 0.0.40
codegen_flags: <defaults>
</compile_context>

<pallas_src>
import functools
from math import sqrt, pi

import jax
import jax.numpy as jnp
from jax.experimental import pallas as pl
from jax.experimental.pallas import tpu as pltpu

_LN_EPS = 1e-5
_GELU_C = sqrt(2.0 / pi)


def _layernorm(x, gamma, beta):
    mu = jnp.mean(x, axis=-1, keepdims=True)
    xc = x - mu
    var = jnp.mean(xc * xc, axis=-1, keepdims=True)
    return xc * jax.lax.rsqrt(var + _LN_EPS) * gamma + beta


def _gelu_tanh(x):
    return 0.5 * x * (1.0 + jnp.tanh(_GELU_C * (x + 0.044715 * x * x * x)))


def transformer_kernel(
    x_ref,
    ln1g_ref, ln1b_ref, wqkv_ref,
    wo_ref, bo_ref,
    ln2g_ref, ln2b_ref,
    w1_ref, b1_ref, w2_ref, b2_ref,
    o_ref,
    x_scratch,
    *, b_s, n, h, d_head,
):
    layer = pl.program_id(0)

    # Load the input activations into the carried VMEM scratch at layer 0.
    @pl.when(layer == 0)
    def _():
        x_scratch[...] = x_ref[...].astype(jnp.float32)

    x = x_scratch[...]                          # (b_s*n, dim)
    dim = x.shape[-1]
    inner = h * d_head
    scale = 1.0 / sqrt(d_head)

    # ---------------- attention sub-block: x = x + MHSA(LN(x)) ----------------
    xn = _layernorm(x, ln1g_ref[...], ln1b_ref[...])
    qkv = jnp.dot(xn, wqkv_ref[...], preferred_element_type=jnp.float32)  # (b*n, 3*inner)
    qkv = qkv.reshape(b_s, n, 3 * inner)

    attn_out = jnp.zeros((b_s * n, dim), jnp.float32)
    for hd in range(h):
        qh = qkv[:, :, hd * d_head:(hd + 1) * d_head]                     # (b, n, d)
        kh = qkv[:, :, inner + hd * d_head:inner + (hd + 1) * d_head]
        vh = qkv[:, :, 2 * inner + hd * d_head:2 * inner + (hd + 1) * d_head]

        att = jnp.einsum('bqd,bkd->bqk', qh, kh,
                         preferred_element_type=jnp.float32) * scale
        att = att - jnp.max(att, axis=-1, keepdims=True)
        p = jnp.exp(att)
        s = jnp.sum(p, axis=-1, keepdims=True)
        # Deferred softmax normalisation: scale the (n, d_head) result instead
        # of dividing the full (n, n) attention matrix.
        ho = jnp.einsum('bqk,bkd->bqd', p, vh,
                        preferred_element_type=jnp.float32) / s

        # Fold the head concat into the output projection: accumulate against
        # the matching sublane-aligned (d_head-row) slice of Wo.
        attn_out = attn_out + jnp.dot(
            ho.reshape(b_s * n, d_head),
            wo_ref[hd * d_head:(hd + 1) * d_head, :],
            preferred_element_type=jnp.float32)

    x = x + attn_out + bo_ref[...]

    # ---------------- feed-forward sub-block: x = x + MLP(LN(x)) --------------
    xn2 = _layernorm(x, ln2g_ref[...], ln2b_ref[...])
    hmid = jnp.dot(xn2, w1_ref[...], preferred_element_type=jnp.float32) + b1_ref[...]
    hmid = _gelu_tanh(hmid)
    ff = jnp.dot(hmid, w2_ref[...], preferred_element_type=jnp.float32) + b2_ref[...]
    x = x + ff

    x_scratch[...] = x

    @pl.when(layer == pl.num_programs(0) - 1)
    def _():
        o_ref[...] = x.astype(o_ref.dtype)


def _wspec(trailing_shape):
    """BlockSpec selecting layer `l` along the leading (depth) axis."""
    nz = len(trailing_shape)
    return pl.BlockSpec((None,) + tuple(trailing_shape),
                        lambda l, _nz=nz: (l,) + (0,) * _nz)


def transformer_forward(x, params, *, heads, dim_head):
    b_s, n, dim = x.shape
    depth = params['ln1_g'].shape[0]
    x2d = x.reshape(b_s * n, dim)

    flat = [
        params['ln1_g'], params['ln1_b'], params['wqkv'],
        params['wo'], params['bo'],
        params['ln2_g'], params['ln2_b'],
        params['w1'], params['b1'], params['w2'], params['b2'],
    ]

    full2d = pl.BlockSpec((b_s * n, dim), lambda l: (0, 0))
    in_specs = [full2d] + [_wspec(a.shape[1:]) for a in flat]

    kernel = functools.partial(transformer_kernel,
                               b_s=b_s, n=n, h=heads, d_head=dim_head)

    out = pl.pallas_call(
        kernel,
        out_shape=jax.ShapeDtypeStruct((b_s * n, dim), jnp.float32),
        grid=(depth,),
        in_specs=in_specs,
        out_specs=full2d,
        scratch_shapes=[pltpu.VMEM((b_s * n, dim), jnp.float32)],
        compiler_params=pltpu.CompilerParams(
            dimension_semantics=("arbitrary",)),   # layers are sequential
    )(x2d, *flat)
    return out.reshape(b_s, n, dim)


def init_params(key, depth, dim, heads, dim_head, mlp_dim):
    """Deterministic synthetic parameters, stored directly in kernel layout:
    matmul weights are (in_features, out_features), biases are (1, out)."""
    inner = heads * dim_head
    ks = jax.random.split(key, 11)
    rnd = lambda k, shape, s=0.05: s * jax.random.normal(k, shape, jnp.float32)
    return dict(
        ln1_g=1.0 + rnd(ks[0], (depth, 1, dim)),
        ln1_b=rnd(ks[1], (depth, 1, dim)),
        wqkv=rnd(ks[2], (depth, dim, 3 * inner)),       # to_qkv (no bias)
        wo=rnd(ks[3], (depth, inner, dim)),             # to_out Linear
        bo=rnd(ks[4], (depth, 1, dim)),
        ln2_g=1.0 + rnd(ks[5], (depth, 1, dim)),
        ln2_b=rnd(ks[6], (depth, 1, dim)),
        w1=rnd(ks[7], (depth, dim, mlp_dim)),           # FF Linear 1
        b1=rnd(ks[8], (depth, 1, mlp_dim)),
        w2=rnd(ks[9], (depth, mlp_dim, dim)),           # FF Linear 2
        b2=rnd(ks[10], (depth, 1, dim)),
    )


def reference(x, params, *, heads, dim_head):
    """Pure-JAX mirror of the PyTorch Transformer.forward (dropout = identity)."""
    depth = params['ln1_g'].shape[0]
    b_s, n, dim = x.shape
    inner = heads * dim_head
    scale = dim_head ** (-0.5)

    def ln(y, g, b):
        mu = jnp.mean(y, -1, keepdims=True)
        var = jnp.mean((y - mu) ** 2, -1, keepdims=True)
        return (y - mu) / jnp.sqrt(var + _LN_EPS) * g + b

    for l in range(depth):
        xn = ln(x, params['ln1_g'][l, 0], params['ln1_b'][l, 0])
        qkv = xn @ params['wqkv'][l]
        q, k, v = jnp.split(qkv, 3, axis=-1)
        q = q.reshape(b_s, n, heads, dim_head).transpose(0, 2, 1, 3)
        k = k.reshape(b_s, n, heads, dim_head).transpose(0, 2, 1, 3)
        v = v.reshape(b_s, n, heads, dim_head).transpose(0, 2, 1, 3)
        att = jax.nn.softmax(
            jnp.einsum('bhqd,bhkd->bhqk', q, k) * scale, axis=-1)
        out = jnp.einsum('bhqk,bhkd->bhqd', att, v)
        out = out.transpose(0, 2, 1, 3).reshape(b_s, n, inner)
        out = out @ params['wo'][l] + params['bo'][l, 0]
        x = x + out

        xn2 = ln(x, params['ln2_g'][l, 0], params['ln2_b'][l, 0])
        hmid = _gelu_tanh(xn2 @ params['w1'][l] + params['b1'][l, 0])
        x = x + hmid @ params['w2'][l] + params['b2'][l, 0]
    return x


if __name__ == "__main__":
    dim, depth, heads, dim_head, mlp_dim = 32, 2, 4, 8, 64
    b_s, seq = 2, 8

    key = jax.random.PRNGKey(0)
    kx, kp = jax.random.split(key)
    x = jax.random.normal(kx, (b_s, seq, dim), jnp.float32)
    params = init_params(kp, depth, dim, heads, dim_head, mlp_dim)

    out = transformer_forward(x, params, heads=heads, dim_head=dim_head)
    out = jax.block_until_ready(out)

    ref = reference(x, params, heads=heads, dim_head=dim_head)
    max_err = float(jnp.max(jnp.abs(out - ref)))
    assert out.shape == (b_s, seq, dim)
    if max_err < 1e-4:
        print("KERNEL_OK")
    else:
        print(f"MISMATCH max_err={max_err}")
</pallas_src>

<mosaic_0001>
module attributes {stable_mosaic.version = 11 : i64} {
  func.func @transformer_kernel(%arg0: i32, %arg1: memref<16x32xf32, #tpu.memory_space<vmem>>, %arg2: memref<1x1x32xf32, #tpu.memory_space<vmem>>, %arg3: memref<1x1x32xf32, #tpu.memory_space<vmem>>, %arg4: memref<1x32x96xf32, #tpu.memory_space<vmem>>, %arg5: memref<1x32x32xf32, #tpu.memory_space<vmem>>, %arg6: memref<1x1x32xf32, #tpu.memory_space<vmem>>, %arg7: memref<1x1x32xf32, #tpu.memory_space<vmem>>, %arg8: memref<1x1x32xf32, #tpu.memory_space<vmem>>, %arg9: memref<1x32x64xf32, #tpu.memory_space<vmem>>, %arg10: memref<1x1x64xf32, #tpu.memory_space<vmem>>, %arg11: memref<1x64x32xf32, #tpu.memory_space<vmem>>, %arg12: memref<1x1x32xf32, #tpu.memory_space<vmem>>, %arg13: memref<16x32xf32, #tpu.memory_space<vmem>>, %arg14: memref<16x32xf32, #tpu.memory_space<vmem>>) attributes {dimension_semantics = [#tpu.dimension_semantics<arbitrary>], iteration_bounds = array<i64: 2>, scalar_prefetch = 0 : i64, scratch_operands = 1 : i64, tpu.core_type = #tpu.core_type<tc>, window_params = [{pipeline_mode = #tpu.pipeline_mode<synchronous>, transform_indices = @transform_0, window_bounds = array<i64: 16, 32>}, {transform_indices = @transform_1, window_bounds = array<i64: 1, 1, 32>}, {transform_indices = @transform_2, window_bounds = array<i64: 1, 1, 32>}, {transform_indices = @transform_3, window_bounds = array<i64: 1, 32, 96>}, {transform_indices = @transform_4, window_bounds = array<i64: 1, 32, 32>}, {transform_indices = @transform_5, window_bounds = array<i64: 1, 1, 32>}, {transform_indices = @transform_6, window_bounds = array<i64: 1, 1, 32>}, {transform_indices = @transform_7, window_bounds = array<i64: 1, 1, 32>}, {transform_indices = @transform_8, window_bounds = array<i64: 1, 32, 64>}, {transform_indices = @transform_9, window_bounds = array<i64: 1, 1, 64>}, {transform_indices = @transform_10, window_bounds = array<i64: 1, 64, 32>}, {transform_indices = @transform_11, window_bounds = array<i64: 1, 1, 32>}, {pipeline_mode = #tpu.pipeline_mode<synchronous>, transform_indices = @transform_12, window_bounds = array<i64: 16, 32>}]} {
    %c0_i32 = arith.constant 0 : i32
    %0 = arith.cmpi eq, %arg0, %c0_i32 : i32
    %1 = arith.extui %0 : i1 to i32
    %c0_i32_0 = arith.constant 0 : i32
    %2 = arith.cmpi ne, %1, %c0_i32_0 : i32
    scf.if %2 {
      %c0_85 = arith.constant 0 : index
      %c0_86 = arith.constant 0 : index
      %178 = vector.load %arg1[%c0_85, %c0_86] : memref<16x32xf32, #tpu.memory_space<vmem>>, vector<16x32xf32>
      %c0_87 = arith.constant 0 : index
      %c0_88 = arith.constant 0 : index
      %179 = vector.load %arg14[%c0_87, %c0_88] : memref<16x32xf32, #tpu.memory_space<vmem>>, vector<16x32xf32>
      tpu.vector_store %arg14[%c0_87, %c0_88], %178 {strides = array<i32>} : memref<16x32xf32, #tpu.memory_space<vmem>>, vector<16x32xf32>,
    } else {
    }
    %c0 = arith.constant 0 : index
    %c0_1 = arith.constant 0 : index
    %3 = vector.load %arg14[%c0, %c0_1] : memref<16x32xf32, #tpu.memory_space<vmem>>, vector<16x32xf32>
    %c0_2 = arith.constant 0 : index
    %c0_3 = arith.constant 0 : index
    %c0_4 = arith.constant 0 : index
    %4 = vector.load %arg2[%c0_2, %c0_3, %c0_4] : memref<1x1x32xf32, #tpu.memory_space<vmem>>, vector<1x1x32xf32>
    %5 = vector.shape_cast %4 : vector<1x1x32xf32> to vector<1x32xf32>
    %c0_5 = arith.constant 0 : index
    %c0_6 = arith.constant 0 : index
    %c0_7 = arith.constant 0 : index
    %6 = vector.load %arg3[%c0_5, %c0_6, %c0_7] : memref<1x1x32xf32, #tpu.memory_space<vmem>>, vector<1x1x32xf32>
    %7 = vector.shape_cast %6 : vector<1x1x32xf32> to vector<1x32xf32>
    %cst = arith.constant dense<0.000000e+00> : vector<16xf32>
    %8 = vector.multi_reduction <add>, %3, %cst [1] : vector<16x32xf32> to vector<16xf32>
    %9 = vector.shape_cast %8 : vector<16xf32> to vector<16x1xf32>
    %cst_8 = arith.constant 3.200000e+01 : f32
    %10 = vector.broadcast %cst_8 : f32 to vector<16x1xf32>
    %11 = arith.divf %9, %10 : vector<16x1xf32>
    %12 = vector.broadcast %11 : vector<16x1xf32> to vector<16x32xf32>
    %13 = arith.subf %3, %12 : vector<16x32xf32>
    %14 = arith.mulf %13, %13 : vector<16x32xf32>
    %cst_9 = arith.constant dense<0.000000e+00> : vector<16xf32>
    %15 = vector.multi_reduction <add>, %14, %cst_9 [1] : vector<16x32xf32> to vector<16xf32>
    %16 = vector.shape_cast %15 : vector<16xf32> to vector<16x1xf32>
    %cst_10 = arith.constant 3.200000e+01 : f32
    %17 = vector.broadcast %cst_10 : f32 to vector<16x1xf32>
    %18 = arith.divf %16, %17 : vector<16x1xf32>
    %cst_11 = arith.constant 9.99999974E-6 : f32
    %19 = vector.broadcast %cst_11 : f32 to vector<16x1xf32>
    %20 = arith.addf %18, %19 : vector<16x1xf32>
    %21 = math.rsqrt %20 : vector<16x1xf32>
    %22 = vector.broadcast %21 : vector<16x1xf32> to vector<16x32xf32>
    %23 = arith.mulf %13, %22 : vector<16x32xf32>
    %24 = vector.broadcast %5 : vector<1x32xf32> to vector<16x32xf32>
    %25 = arith.mulf %23, %24 : vector<16x32xf32>
    %26 = vector.broadcast %7 : vector<1x32xf32> to vector<16x32xf32>
    %27 = arith.addf %25, %26 : vector<16x32xf32>
    %c0_12 = arith.constant 0 : index
    %c0_13 = arith.constant 0 : index
    %c0_14 = arith.constant 0 : index
    %28 = vector.load %arg4[%c0_12, %c0_13, %c0_14] : memref<1x32x96xf32, #tpu.memory_space<vmem>>, vector<1x32x96xf32>
    %29 = vector.shape_cast %28 : vector<1x32x96xf32> to vector<32x96xf32>
    %cst_15 = arith.constant dense<0.000000e+00> : vector<16x96xf32>
    %30 = tpu.matmul %27, %29, %cst_15 {dimension_numbers = #tpu.dot_dimension_numbers<[1], [0], [0], [1], [0, 0, 1, 1], [], []>} : vector<16x32xf32>, vector<32x96xf32>, vector<16x96xf32> -> vector<16x96xf32>
    %31 = vector.shape_cast %30 : vector<16x96xf32> to vector<2x8x96xf32>
    %cst_16 = arith.constant 0.000000e+00 : f32
    %32 = vector.broadcast %cst_16 : f32 to vector<16x32xf32>
    %33 = vector.extract_strided_slice %31 {offsets = [0, 0, 0], sizes = [2, 8, 8], strides = [1, 1, 1]} : vector<2x8x96xf32> to vector<2x8x8xf32>
    %34 = vector.extract_strided_slice %31 {offsets = [0, 0, 32], sizes = [2, 8, 8], strides = [1, 1, 1]} : vector<2x8x96xf32> to vector<2x8x8xf32>
    %35 = vector.extract_strided_slice %31 {offsets = [0, 0, 64], sizes = [2, 8, 8], strides = [1, 1, 1]} : vector<2x8x96xf32> to vector<2x8x8xf32>
    "tpu.trace_start"() <{level = 10 : i32, message = "bqd,bkd->bqk"}> : () -> ()
    %cst_17 = arith.constant dense<0.000000e+00> : vector<2x8x8xf32>
    %36 = tpu.matmul %33, %34, %cst_17 {dimension_numbers = #tpu.dot_dimension_numbers<[2], [2], [1], [1], [0, 0, 0, 1, 1, 1], [0], [0]>} : vector<2x8x8xf32>, vector<2x8x8xf32>, vector<2x8x8xf32> -> vector<2x8x8xf32>
    "tpu.trace_stop"() : () -> ()
    %cst_18 = arith.constant 0.353553385 : f32
    %37 = vector.broadcast %cst_18 : f32 to vector<2x8x8xf32>
    %38 = arith.mulf %36, %37 : vector<2x8x8xf32>
    %cst_19 = arith.constant dense<0xFF800000> : vector<2x8xf32>
    %39 = vector.multi_reduction <maximumf>, %38, %cst_19 [2] : vector<2x8x8xf32> to vector<2x8xf32>
    %40 = vector.shape_cast %39 : vector<2x8xf32> to vector<2x8x1xf32>
    %41 = vector.broadcast %40 : vector<2x8x1xf32> to vector<2x8x8xf32>
    %42 = arith.subf %38, %41 : vector<2x8x8xf32>
    %43 = math.exp %42 : vector<2x8x8xf32>
    %cst_20 = arith.constant dense<0.000000e+00> : vector<2x8xf32>
    %44 = vector.multi_reduction <add>, %43, %cst_20 [2] : vector<2x8x8xf32> to vector<2x8xf32>
    %45 = vector.shape_cast %44 : vector<2x8xf32> to vector<2x8x1xf32>
    "tpu.trace_start"() <{level = 10 : i32, message = "bqk,bkd->bqd"}> : () -> ()
    %cst_21 = arith.constant dense<0.000000e+00> : vector<2x8x8xf32>
    %46 = tpu.matmul %43, %35, %cst_21 {dimension_numbers = #tpu.dot_dimension_numbers<[2], [1], [1], [2], [0, 0, 0, 1, 1, 2], [0], [0]>} : vector<2x8x8xf32>, vector<2x8x8xf32>, vector<2x8x8xf32> -> vector<2x8x8xf32>
    "tpu.trace_stop"() : () -> ()
    %47 = vector.broadcast %45 : vector<2x8x1xf32> to vector<2x8x8xf32>
    %48 = arith.divf %46, %47 : vector<2x8x8xf32>
    %49 = vector.shape_cast %48 : vector<2x8x8xf32> to vector<16x8xf32>
    %c0_22 = arith.constant 0 : index
    %c0_23 = arith.constant 0 : index
    %c0_24 = arith.constant 0 : index
    %50 = vector.load %arg5[%c0_22, %c0_23, %c0_24] : memref<1x32x32xf32, #tpu.memory_space<vmem>>, vector<1x8x32xf32>
    %51 = vector.shape_cast %50 : vector<1x8x32xf32> to vector<8x32xf32>
    %cst_25 = arith.constant dense<0.000000e+00> : vector<16x32xf32>
    %52 = tpu.matmul %49, %51, %cst_25 {dimension_numbers = #tpu.dot_dimension_numbers<[1], [0], [0], [1], [0, 0, 1, 1], [], []>} : vector<16x8xf32>, vector<8x32xf32>, vector<16x32xf32> -> vector<16x32xf32>
    %53 = arith.addf %32, %52 : vector<16x32xf32>
    %54 = vector.extract_strided_slice %31 {offsets = [0, 0, 8], sizes = [2, 8, 8], strides = [1, 1, 1]} : vector<2x8x96xf32> to vector<2x8x8xf32>
    %55 = vector.extract_strided_slice %31 {offsets = [0, 0, 40], sizes = [2, 8, 8], strides = [1, 1, 1]} : vector<2x8x96xf32> to vector<2x8x8xf32>
    %56 = vector.extract_strided_slice %31 {offsets = [0, 0, 72], sizes = [2, 8, 8], strides = [1, 1, 1]} : vector<2x8x96xf32> to vector<2x8x8xf32>
    "tpu.trace_start"() <{level = 10 : i32, message = "bqd,bkd->bqk"}> : () -> ()
    %cst_26 = arith.constant dense<0.000000e+00> : vector<2x8x8xf32>
    %57 = tpu.matmul %54, %55, %cst_26 {dimension_numbers = #tpu.dot_dimension_numbers<[2], [2], [1], [1], [0, 0, 0, 1, 1, 1], [0], [0]>} : vector<2x8x8xf32>, vector<2x8x8xf32>, vector<2x8x8xf32> -> vector<2x8x8xf32>
    "tpu.trace_stop"() : () -> ()
    %cst_27 = arith.constant 0.353553385 : f32
    %58 = vector.broadcast %cst_27 : f32 to vector<2x8x8xf32>
    %59 = arith.mulf %57, %58 : vector<2x8x8xf32>
    %cst_28 = arith.constant dense<0xFF800000> : vector<2x8xf32>
    %60 = vector.multi_reduction <maximumf>, %59, %cst_28 [2] : vector<2x8x8xf32> to vector<2x8xf32>
    %61 = vector.shape_cast %60 : vector<2x8xf32> to vector<2x8x1xf32>
    %62 = vector.broadcast %61 : vector<2x8x1xf32> to vector<2x8x8xf32>
    %63 = arith.subf %59, %62 : vector<2x8x8xf32>
    %64 = math.exp %63 : vector<2x8x8xf32>
    %cst_29 = arith.constant dense<0.000000e+00> : vector<2x8xf32>
    %65 = vector.multi_reduction <add>, %64, %cst_29 [2] : vector<2x8x8xf32> to vector<2x8xf32>
    %66 = vector.shape_cast %65 : vector<2x8xf32> to vector<2x8x1xf32>
    "tpu.trace_start"() <{level = 10 : i32, message = "bqk,bkd->bqd"}> : () -> ()
    %cst_30 = arith.constant dense<0.000000e+00> : vector<2x8x8xf32>
    %67 = tpu.matmul %64, %56, %cst_30 {dimension_numbers = #tpu.dot_dimension_numbers<[2], [1], [1], [2], [0, 0, 0, 1, 1, 2], [0], [0]>} : vector<2x8x8xf32>, vector<2x8x8xf32>, vector<2x8x8xf32> -> vector<2x8x8xf32>
    "tpu.trace_stop"() : () -> ()
    %68 = vector.broadcast %66 : vector<2x8x1xf32> to vector<2x8x8xf32>
    %69 = arith.divf %67, %68 : vector<2x8x8xf32>
    %70 = vector.shape_cast %69 : vector<2x8x8xf32> to vector<16x8xf32>
    %c0_31 = arith.constant 0 : index
    %c8 = arith.constant 8 : index
    %c0_32 = arith.constant 0 : index
    %71 = vector.load %arg5[%c0_31, %c8, %c0_32] : memref<1x32x32xf32, #tpu.memory_space<vmem>>, vector<1x8x32xf32>
    %72 = vector.shape_cast %71 : vector<1x8x32xf32> to vector<8x32xf32>
    %cst_33 = arith.constant dense<0.000000e+00> : vector<16x32xf32>
    %73 = tpu.matmul %70, %72, %cst_33 {dimension_numbers = #tpu.dot_dimension_numbers<[1], [0], [0], [1], [0, 0, 1, 1], [], []>} : vector<16x8xf32>, vector<8x32xf32>, vector<16x32xf32> -> vector<16x32xf32>
    %74 = arith.addf %53, %73 : vector<16x32xf32>
    %75 = vector.extract_strided_slice %31 {offsets = [0, 0, 16], sizes = [2, 8, 8], strides = [1, 1, 1]} : vector<2x8x96xf32> to vector<2x8x8xf32>
    %76 = vector.extract_strided_slice %31 {offsets = [0, 0, 48], sizes = [2, 8, 8], strides = [1, 1, 1]} : vector<2x8x96xf32> to vector<2x8x8xf32>
    %77 = vector.extract_strided_slice %31 {offsets = [0, 0, 80], sizes = [2, 8, 8], strides = [1, 1, 1]} : vector<2x8x96xf32> to vector<2x8x8xf32>
    "tpu.trace_start"() <{level = 10 : i32, message = "bqd,bkd->bqk"}> : () -> ()
    %cst_34 = arith.constant dense<0.000000e+00> : vector<2x8x8xf32>
    %78 = tpu.matmul %75, %76, %cst_34 {dimension_numbers = #tpu.dot_dimension_numbers<[2], [2], [1], [1], [0, 0, 0, 1, 1, 1], [0], [0]>} : vector<2x8x8xf32>, vector<2x8x8xf32>, vector<2x8x8xf32> -> vector<2x8x8xf32>
    "tpu.trace_stop"() : () -> ()
    %cst_35 = arith.constant 0.353553385 : f32
    %79 = vector.broadcast %cst_35 : f32 to vector<2x8x8xf32>
    %80 = arith.mulf %78, %79 : vector<2x8x8xf32>
    %cst_36 = arith.constant dense<0xFF800000> : vector<2x8xf32>
    %81 = vector.multi_reduction <maximumf>, %80, %cst_36 [2] : vector<2x8x8xf32> to vector<2x8xf32>
    %82 = vector.shape_cast %81 : vector<2x8xf32> to vector<2x8x1xf32>
    %83 = vector.broadcast %82 : vector<2x8x1xf32> to vector<2x8x8xf32>
    %84 = arith.subf %80, %83 : vector<2x8x8xf32>
    %85 = math.exp %84 : vector<2x8x8xf32>
    %cst_37 = arith.constant dense<0.000000e+00> : vector<2x8xf32>
    %86 = vector.multi_reduction <add>, %85, %cst_37 [2] : vector<2x8x8xf32> to vector<2x8xf32>
    %87 = vector.shape_cast %86 : vector<2x8xf32> to vector<2x8x1xf32>
    "tpu.trace_start"() <{level = 10 : i32, message = "bqk,bkd->bqd"}> : () -> ()
    %cst_38 = arith.constant dense<0.000000e+00> : vector<2x8x8xf32>
    %88 = tpu.matmul %85, %77, %cst_38 {dimension_numbers = #tpu.dot_dimension_numbers<[2], [1], [1], [2], [0, 0, 0, 1, 1, 2], [0], [0]>} : vector<2x8x8xf32>, vector<2x8x8xf32>, vector<2x8x8xf32> -> vector<2x8x8xf32>
    "tpu.trace_stop"() : () -> ()
    %89 = vector.broadcast %87 : vector<2x8x1xf32> to vector<2x8x8xf32>
    %90 = arith.divf %88, %89 : vector<2x8x8xf32>
    %91 = vector.shape_cast %90 : vector<2x8x8xf32> to vector<16x8xf32>
    %c0_39 = arith.constant 0 : index
    %c16 = arith.constant 16 : index
    %c0_40 = arith.constant 0 : index
    %92 = vector.load %arg5[%c0_39, %c16, %c0_40] : memref<1x32x32xf32, #tpu.memory_space<vmem>>, vector<1x8x32xf32>
    %93 = vector.shape_cast %92 : vector<1x8x32xf32> to vector<8x32xf32>
    %cst_41 = arith.constant dense<0.000000e+00> : vector<16x32xf32>
    %94 = tpu.matmul %91, %93, %cst_41 {dimension_numbers = #tpu.dot_dimension_numbers<[1], [0], [0], [1], [0, 0, 1, 1], [], []>} : vector<16x8xf32>, vector<8x32xf32>, vector<16x32xf32> -> vector<16x32xf32>
    %95 = arith.addf %74, %94 : vector<16x32xf32>
    %96 = vector.extract_strided_slice %31 {offsets = [0, 0, 24], sizes = [2, 8, 8], strides = [1, 1, 1]} : vector<2x8x96xf32> to vector<2x8x8xf32>
    %97 = vector.extract_strided_slice %31 {offsets = [0, 0, 56], sizes = [2, 8, 8], strides = [1, 1, 1]} : vector<2x8x96xf32> to vector<2x8x8xf32>
    %98 = vector.extract_strided_slice %31 {offsets = [0, 0, 88], sizes = [2, 8, 8], strides = [1, 1, 1]} : vector<2x8x96xf32> to vector<2x8x8xf32>
    "tpu.trace_start"() <{level = 10 : i32, message = "bqd,bkd->bqk"}> : () -> ()
    %cst_42 = arith.constant dense<0.000000e+00> : vector<2x8x8xf32>
    %99 = tpu.matmul %96, %97, %cst_42 {dimension_numbers = #tpu.dot_dimension_numbers<[2], [2], [1], [1], [0, 0, 0, 1, 1, 1], [0], [0]>} : vector<2x8x8xf32>, vector<2x8x8xf32>, vector<2x8x8xf32> -> vector<2x8x8xf32>
    "tpu.trace_stop"() : () -> ()
    %cst_43 = arith.constant 0.353553385 : f32
    %100 = vector.broadcast %cst_43 : f32 to vector<2x8x8xf32>
    %101 = arith.mulf %99, %100 : vector<2x8x8xf32>
    %cst_44 = arith.constant dense<0xFF800000> : vector<2x8xf32>
    %102 = vector.multi_reduction <maximumf>, %101, %cst_44 [2] : vector<2x8x8xf32> to vector<2x8xf32>
    %103 = vector.shape_cast %102 : vector<2x8xf32> to vector<2x8x1xf32>
    %104 = vector.broadcast %103 : vector<2x8x1xf32> to vector<2x8x8xf32>
    %105 = arith.subf %101, %104 : vector<2x8x8xf32>
    %106 = math.exp %105 : vector<2x8x8xf32>
    %cst_45 = arith.constant dense<0.000000e+00> : vector<2x8xf32>
    %107 = vector.multi_reduction <add>, %106, %cst_45 [2] : vector<2x8x8xf32> to vector<2x8xf32>
    %108 = vector.shape_cast %107 : vector<2x8xf32> to vector<2x8x1xf32>
    "tpu.trace_start"() <{level = 10 : i32, message = "bqk,bkd->bqd"}> : () -> ()
    %cst_46 = arith.constant dense<0.000000e+00> : vector<2x8x8xf32>
    %109 = tpu.matmul %106, %98, %cst_46 {dimension_numbers = #tpu.dot_dimension_numbers<[2], [1], [1], [2], [0, 0, 0, 1, 1, 2], [0], [0]>} : vector<2x8x8xf32>, vector<2x8x8xf32>, vector<2x8x8xf32> -> vector<2x8x8xf32>
    "tpu.trace_stop"() : () -> ()
    %110 = vector.broadcast %108 : vector<2x8x1xf32> to vector<2x8x8xf32>
    %111 = arith.divf %109, %110 : vector<2x8x8xf32>
    %112 = vector.shape_cast %111 : vector<2x8x8xf32> to vector<16x8xf32>
    %c0_47 = arith.constant 0 : index
    %c24 = arith.constant 24 : index
    %c0_48 = arith.constant 0 : index
    %113 = vector.load %arg5[%c0_47, %c24, %c0_48] : memref<1x32x32xf32, #tpu.memory_space<vmem>>, vector<1x8x32xf32>
    %114 = vector.shape_cast %113 : vector<1x8x32xf32> to vector<8x32xf32>
    %cst_49 = arith.constant dense<0.000000e+00> : vector<16x32xf32>
    %115 = tpu.matmul %112, %114, %cst_49 {dimension_numbers = #tpu.dot_dimension_numbers<[1], [0], [0], [1], [0, 0, 1, 1], [], []>} : vector<16x8xf32>, vector<8x32xf32>, vector<16x32xf32> -> vector<16x32xf32>
    %116 = arith.addf %95, %115 : vector<16x32xf32>
    %117 = arith.addf %3, %116 : vector<16x32xf32>
    %c0_50 = arith.constant 0 : index
    %c0_51 = arith.constant 0 : index
    %c0_52 = arith.constant 0 : index
    %118 = vector.load %arg6[%c0_50, %c0_51, %c0_52] : memref<1x1x32xf32, #tpu.memory_space<vmem>>, vector<1x1x32xf32>
    %119 = vector.shape_cast %118 : vector<1x1x32xf32> to vector<1x32xf32>
    %120 = vector.broadcast %119 : vector<1x32xf32> to vector<16x32xf32>
    %121 = arith.addf %117, %120 : vector<16x32xf32>
    %c0_53 = arith.constant 0 : index
    %c0_54 = arith.constant 0 : index
    %c0_55 = arith.constant 0 : index
    %122 = vector.load %arg7[%c0_53, %c0_54, %c0_55] : memref<1x1x32xf32, #tpu.memory_space<vmem>>, vector<1x1x32xf32>
    %123 = vector.shape_cast %122 : vector<1x1x32xf32> to vector<1x32xf32>
    %c0_56 = arith.constant 0 : index
    %c0_57 = arith.constant 0 : index
    %c0_58 = arith.constant 0 : index
    %124 = vector.load %arg8[%c0_56, %c0_57, %c0_58] : memref<1x1x32xf32, #tpu.memory_space<vmem>>, vector<1x1x32xf32>
    %125 = vector.shape_cast %124 : vector<1x1x32xf32> to vector<1x32xf32>
    %cst_59 = arith.constant dense<0.000000e+00> : vector<16xf32>
    %126 = vector.multi_reduction <add>, %121, %cst_59 [1] : vector<16x32xf32> to vector<16xf32>
    %127 = vector.shape_cast %126 : vector<16xf32> to vector<16x1xf32>
    %cst_60 = arith.constant 3.200000e+01 : f32
    %128 = vector.broadcast %cst_60 : f32 to vector<16x1xf32>
    %129 = arith.divf %127, %128 : vector<16x1xf32>
    %130 = vector.broadcast %129 : vector<16x1xf32> to vector<16x32xf32>
    %131 = arith.subf %121, %130 : vector<16x32xf32>
    %132 = arith.mulf %131, %131 : vector<16x32xf32>
    %cst_61 = arith.constant dense<0.000000e+00> : vector<16xf32>
    %133 = vector.multi_reduction <add>, %132, %cst_61 [1] : vector<16x32xf32> to vector<16xf32>
    %134 = vector.shape_cast %133 : vector<16xf32> to vector<16x1xf32>
    %cst_62 = arith.constant 3.200000e+01 : f32
    %135 = vector.broadcast %cst_62 : f32 to vector<16x1xf32>
    %136 = arith.divf %134, %135 : vector<16x1xf32>
    %cst_63 = arith.constant 9.99999974E-6 : f32
    %137 = vector.broadcast %cst_63 : f32 to vector<16x1xf32>
    %138 = arith.addf %136, %137 : vector<16x1xf32>
    %139 = math.rsqrt %138 : vector<16x1xf32>
    %140 = vector.broadcast %139 : vector<16x1xf32> to vector<16x32xf32>
    %141 = arith.mulf %131, %140 : vector<16x32xf32>
    %142 = vector.broadcast %123 : vector<1x32xf32> to vector<16x32xf32>
    %143 = arith.mulf %141, %142 : vector<16x32xf32>
    %144 = vector.broadcast %125 : vector<1x32xf32> to vector<16x32xf32>
    %145 = arith.addf %143, %144 : vector<16x32xf32>
    %c0_64 = arith.constant 0 : index
    %c0_65 = arith.constant 0 : index
    %c0_66 = arith.constant 0 : index
    %146 = vector.load %arg9[%c0_64, %c0_65, %c0_66] : memref<1x32x64xf32, #tpu.memory_space<vmem>>, vector<1x32x64xf32>
    %147 = vector.shape_cast %146 : vector<1x32x64xf32> to vector<32x64xf32>
    %cst_67 = arith.constant dense<0.000000e+00> : vector<16x64xf32>
    %148 = tpu.matmul %145, %147, %cst_67 {dimension_numbers = #tpu.dot_dimension_numbers<[1], [0], [0], [1], [0, 0, 1, 1], [], []>} : vector<16x32xf32>, vector<32x64xf32>, vector<16x64xf32> -> vector<16x64xf32>
    %c0_68 = arith.constant 0 : index
    %c0_69 = arith.constant 0 : index
    %c0_70 = arith.constant 0 : index
    %149 = vector.load %arg10[%c0_68, %c0_69, %c0_70] : memref<1x1x64xf32, #tpu.memory_space<vmem>>, vector<1x1x64xf32>
    %150 = vector.shape_cast %149 : vector<1x1x64xf32> to vector<1x64xf32>
    %151 = vector.broadcast %150 : vector<1x64xf32> to vector<16x64xf32>
    %152 = arith.addf %148, %151 : vector<16x64xf32>
    %cst_71 = arith.constant 5.000000e-01 : f32
    %153 = vector.broadcast %cst_71 : f32 to vector<16x64xf32>
    %154 = arith.mulf %153, %152 : vector<16x64xf32>
    %cst_72 = arith.constant 4.471500e-02 : f32
    %155 = vector.broadcast %cst_72 : f32 to vector<16x64xf32>
    %156 = arith.mulf %155, %152 : vector<16x64xf32>
    %157 = arith.mulf %156, %152 : vector<16x64xf32>
    %158 = arith.mulf %157, %152 : vector<16x64xf32>
    %159 = arith.addf %152, %158 : vector<16x64xf32>
    %cst_73 = arith.constant 0.797884583 : f32
    %160 = vector.broadcast %cst_73 : f32 to vector<16x64xf32>
    %161 = arith.mulf %160, %159 : vector<16x64xf32>
    %162 = math.tanh %161 : vector<16x64xf32>
    %cst_74 = arith.constant 1.000000e+00 : f32
    %163 = vector.broadcast %cst_74 : f32 to vector<16x64xf32>
    %164 = arith.addf %163, %162 : vector<16x64xf32>
    %165 = arith.mulf %154, %164 : vector<16x64xf32>
    %c0_75 = arith.constant 0 : index
    %c0_76 = arith.constant 0 : index
    %c0_77 = arith.constant 0 : index
    %166 = vector.load %arg11[%c0_75, %c0_76, %c0_77] : memref<1x64x32xf32, #tpu.memory_space<vmem>>, vector<1x64x32xf32>
    %167 = vector.shape_cast %166 : vector<1x64x32xf32> to vector<64x32xf32>
    %cst_78 = arith.constant dense<0.000000e+00> : vector<16x32xf32>
    %168 = tpu.matmul %165, %167, %cst_78 {dimension_numbers = #tpu.dot_dimension_numbers<[1], [0], [0], [1], [0, 0, 1, 1], [], []>} : vector<16x64xf32>, vector<64x32xf32>, vector<16x32xf32> -> vector<16x32xf32>
    %c0_79 = arith.constant 0 : index
    %c0_80 = arith.constant 0 : index
    %c0_81 = arith.constant 0 : index
    %169 = vector.load %arg12[%c0_79, %c0_80, %c0_81] : memref<1x1x32xf32, #tpu.memory_space<vmem>>, vector<1x1x32xf32>
    %170 = vector.shape_cast %169 : vector<1x1x32xf32> to vector<1x32xf32>
    %171 = vector.broadcast %170 : vector<1x32xf32> to vector<16x32xf32>
    %172 = arith.addf %168, %171 : vector<16x32xf32>
    %173 = arith.addf %121, %172 : vector<16x32xf32>
    %c0_82 = arith.constant 0 : index
    %c0_83 = arith.constant 0 : index
    %174 = vector.load %arg14[%c0_82, %c0_83] : memref<16x32xf32, #tpu.memory_space<vmem>>, vector<16x32xf32>
    tpu.vector_store %arg14[%c0_82, %c0_83], %173 {strides = array<i32>} : memref<16x32xf32, #tpu.memory_space<vmem>>, vector<16x32xf32>,
    %c1_i32 = arith.constant 1 : i32
    %175 = arith.cmpi eq, %arg0, %c1_i32 : i32
    %176 = arith.extui %175 : i1 to i32
    %c0_i32_84 = arith.constant 0 : i32
    %177 = arith.cmpi ne, %176, %c0_i32_84 : i32
    scf.if %177 {
      %c0_85 = arith.constant 0 : index
      %c0_86 = arith.constant 0 : index
      %178 = vector.load %arg13[%c0_85, %c0_86] : memref<16x32xf32, #tpu.memory_space<vmem>>, vector<16x32xf32>
      tpu.vector_store %arg13[%c0_85, %c0_86], %173 {strides = array<i32>} : memref<16x32xf32, #tpu.memory_space<vmem>>, vector<16x32xf32>,
    } else {
    }
    return
  }
  func.func @transform_0(%arg0: i32) -> (i32, i32) {
    %c0_i32 = arith.constant 0 : i32
    %c0_i32_0 = arith.constant 0 : i32
    %c0_i32_1 = arith.constant 0 : i32
    return %c0_i32, %c0_i32_0 : i32, i32
  }
  func.func @transform_1(%arg0: i32) -> (i32, i32, i32) {
    %c0_i32 = arith.constant 0 : i32
    %c0_i32_0 = arith.constant 0 : i32
    %c0_i32_1 = arith.constant 0 : i32
    return %arg0, %c0_i32, %c0_i32_0 : i32, i32, i32
  }
  func.func @transform_2(%arg0: i32) -> (i32, i32, i32) {
    %c0_i32 = arith.constant 0 : i32
    %c0_i32_0 = arith.constant 0 : i32
    %c0_i32_1 = arith.constant 0 : i32
    return %arg0, %c0_i32, %c0_i32_0 : i32, i32, i32
  }
  func.func @transform_3(%arg0: i32) -> (i32, i32, i32) {
    %c0_i32 = arith.constant 0 : i32
    %c0_i32_0 = arith.constant 0 : i32
    %c0_i32_1 = arith.constant 0 : i32
    return %arg0, %c0_i32, %c0_i32_0 : i32, i32, i32
  }
  func.func @transform_4(%arg0: i32) -> (i32, i32, i32) {
    %c0_i32 = arith.constant 0 : i32
    %c0_i32_0 = arith.constant 0 : i32
    %c0_i32_1 = arith.constant 0 : i32
    return %arg0, %c0_i32, %c0_i32_0 : i32, i32, i32
  }
  func.func @transform_5(%arg0: i32) -> (i32, i32, i32) {
    %c0_i32 = arith.constant 0 : i32
    %c0_i32_0 = arith.constant 0 : i32
    %c0_i32_1 = arith.constant 0 : i32
    return %arg0, %c0_i32, %c0_i32_0 : i32, i32, i32
  }
  func.func @transform_6(%arg0: i32) -> (i32, i32, i32) {
    %c0_i32 = arith.constant 0 : i32
    %c0_i32_0 = arith.constant 0 : i32
    %c0_i32_1 = arith.constant 0 : i32
    return %arg0, %c0_i32, %c0_i32_0 : i32, i32, i32
  }
  func.func @transform_7(%arg0: i32) -> (i32, i32, i32) {
    %c0_i32 = arith.constant 0 : i32
    %c0_i32_0 = arith.constant 0 : i32
    %c0_i32_1 = arith.constant 0 : i32
    return %arg0, %c0_i32, %c0_i32_0 : i32, i32, i32
  }
  func.func @transform_8(%arg0: i32) -> (i32, i32, i32) {
    %c0_i32 = arith.constant 0 : i32
    %c0_i32_0 = arith.constant 0 : i32
    %c0_i32_1 = arith.constant 0 : i32
    return %arg0, %c0_i32, %c0_i32_0 : i32, i32, i32
  }
  func.func @transform_9(%arg0: i32) -> (i32, i32, i32) {
    %c0_i32 = arith.constant 0 : i32
    %c0_i32_0 = arith.constant 0 : i32
    %c0_i32_1 = arith.constant 0 : i32
    return %arg0, %c0_i32, %c0_i32_0 : i32, i32, i32
  }
  func.func @transform_10(%arg0: i32) -> (i32, i32, i32) {
    %c0_i32 = arith.constant 0 : i32
    %c0_i32_0 = arith.constant 0 : i32
    %c0_i32_1 = arith.constant 0 : i32
    return %arg0, %c0_i32, %c0_i32_0 : i32, i32, i32
  }
  func.func @transform_11(%arg0: i32) -> (i32, i32, i32) {
    %c0_i32 = arith.constant 0 : i32
    %c0_i32_0 = arith.constant 0 : i32
    %c0_i32_1 = arith.constant 0 : i32
    return %arg0, %c0_i32, %c0_i32_0 : i32, i32, i32
  }
  func.func @transform_12(%arg0: i32) -> (i32, i32) {
    %c0_i32 = arith.constant 0 : i32
    %c0_i32_0 = arith.constant 0 : i32
    %c0_i32_1 = arith.constant 0 : i32
    return %c0_i32, %c0_i32_0 : i32, i32
  }
}

</mosaic_0001>

<bundles_post_ra>
// kernel: tpu_custom_call.1
= control target key start
LH: loop header
LB: loop body
LE: loop exit
PB: predicated region body
PF: predicated region fallthrough
CT: control target
= control target key end

     0   :  { %s3716_s0 = inlined_call_operand.hbm [shape: f32[16,32], index: 0, kind: input, shape index: {}]   ;;  %s3717_s1 = inlined_call_operand.vmem [shape: f32[2,1,32], index: 1, kind: input, shape index: {}]   ;;  %s3718_s2 = inlined_call_operand.vmem [shape: f32[2,1,32], index: 2, kind: input, shape index: {}]   ;;  %s3719_s3 = inlined_call_operand.vmem [shape: f32[2,32,96], index: 3, kind: input, shape index: {}]   ;;  %s3720_s4 = inlined_call_operand.vmem [shape: f32[2,32,32], index: 4, kind: input, shape index: {}]   ;;  %s3721_s5 = inlined_call_operand.vmem [shape: f32[2,1,32], index: 5, kind: input, shape index: {}]   ;;  %s3722_s6 = inlined_call_operand.vmem [shape: f32[2,1,32], index: 6, kind: input, shape index: {}]   ;;  %s3723_s7 = inlined_call_operand.vmem [shape: f32[2,1,32], index: 7, kind: input, shape index: {}]   ;;  %s3724_s8 = inlined_call_operand.vmem [shape: f32[2,32,64], index: 8, kind: input, shape index: {}]   ;;  %s3725_s9 = inlined_call_operand.vmem [shape: f32[2,1,64], index: 9, kind: input, shape index: {}]   ;;  %s3726_s10 = inlined_call_operand.vmem [shape: f32[2,64,32], index: 10, kind: input, shape index: {}]   ;;  %s3727_s11 = inlined_call_operand.vmem [shape: f32[2,1,32], index: 11, kind: input, shape index: {}]   ;;  %s3728_s12 = inlined_call_operand.hbm [shape: f32[16,32], index: 12, kind: output, shape index: {}]  }
   0x1   :  { %3732 = sst [smem:[#allocation10_spill]] %s3716_s0 }
   0x2   :  { %3733 = sst [smem:[#allocation11_spill]] %s3719_s3 }
   0x3   :  { %3734 = sst [smem:[#allocation12_spill]] %s3720_s4 }
   0x4   :  { %17 = vsyncpa [#allocation4], 0 }
   0x5   :  { %18 = vsyncpa [#allocation5], 0  ;;  %s3360_s21 = smov 0  }
   0x6 LB: > { %3735 = sst [smem:[#allocation9_spill]] %s3274_s21  ;;  %s3366_s22 = sadd.s32 4294967295, %s3274_s21   ;;  %s3274_s21 = sphi %s3360_s21, %s24_s21  }
   0x7   : > { %p2806_p0 = scmp.ge.s32.totalorder %s3274_s21, 1  ;;  %p357_p1 = scmp.lt.s32.totalorder %s3274_s21, 3 }
   0x8   : > { %s3276_s23 = smov [#allocation3]   ;;  %p3729_p4 = scmp.eq.s32.totalorder %s3366_s22, 0 }
   0x9   : > { %s369_s24 = sshll.u32 %s3276_s23, 4  ;;  %p3371_p3 = pnand %p2806_p0, %p357_p1  ;;  %s370_s24 = int_to_ptr.vmem [resolvable:$true] %s369_s24 }
   0xa   : > { %s3738_s0 = sld [smem:[#allocation10_spill]] }
   0xb   : > { %s3736_s25 = scalar_select %p3371_p3, 1, 0 }
   0xc   : > { %p3127_p5 = pneg %p3371_p3 }
   0xe   : > { %p3380_p6 = pnand %p3729_p4, %p3127_p5 }
  0x10   : > { %s3206_s29 = scalar_lea.hbm %s3738_s0, 256  ;;  %p3208_p8 = pneg %p3380_p6 }
  0x11   : > { %p3207_p7 = scmp.ne.s32.totalorder %s3738_s0, %s3206_s29  ;;  %p3213_p11 = scmp.lt.u32.totalorder %s3206_s29, %s3738_s0 }
  0x13   : > { %p3209_p9 = pnand %p3208_p8, %p3207_p7 }
  0x15   : > { %p3210_p10 = pneg %p3209_p9 }
  0x17   : > { %p3215_p12 = pnand %p3213_p11, %p3210_p10 }
  0x19   : > { %3218 = shalt.err (!%p3215_p12)
}
  0x1a   : > { %s3219_s16 = scalar_lea.vmem %s370_s24, 256  ;;  %p3227_p5 = scmp.lt.s32.totalorder %s370_s24, %s370_s24 }
  0x1b   : > { %p3220_p13 = scmp.ne.s32.totalorder %s370_s24, %s3219_s16  ;;  %p3228_p2 = scmp.lt.s32.totalorder %s3219_s16, %s3219_s16 }
  0x1d   : > { %p3222_p0 = pnand %p3220_p13, %p3208_p8  ;;  %p3229_p4 = por %p3228_p2, %p3227_p5 }
  0x1f   : > { %p3223_p1 = pneg %p3222_p0 }
  0x21   : > { %p3230_p3 = pnand %p3229_p4, %p3223_p1 }
  0x23   : > { %3233 = shalt.err (!%p3230_p3)
}
  0x24   : > { %s3277_s17 = smov 128   ;;  %s3278_s18 = smov 8  }
  0x25   : > { %3130 = dma.hbm_to_vmem [thread:$0]  (!%p3380_p6), %s3738_s0, 256, %s370_s24, [#allocation4], %s3277_s17, %s3277_s17, %s3278_s18  }
  0x26   : > { %p3739_p7 = scmp.ne.s32.totalorder %s3736_s25, 0 }
  0x27   : > { %p3740_p9 = scmp.eq.s32.totalorder (!%p3739_p7), %s3366_s22, 0 }
  0x28   : > { %459 = sbr.rel (%p3739_p7) target bundleno = 3663 (0xe4f), region = 68 }
  0x2f   : > { %3265 = dma.done.wait (%p3740_p9), [#allocation4], 256   ;;  %p3741_p8 = pmov %p3740_p9 }
  0x30   : > { %p532_p2 = scmp.lt.s32.totalorder %s3366_s22, 1  ;;  %s3742_s3 = sld [smem:[#allocation11_spill]] }
  0x31   : > { %3267 = vsyncadd (%p3741_p8), [#allocation4], 4294967040  ;;  %s3743_s4 = sld [smem:[#allocation12_spill]]  ;;  %p3744_p3 = scmp.ne.s32.totalorder %s3366_s22, 0 }
  0x32   : > { %s3408_s23 = scalar_select %p532_p2, %s3366_s22, 1 }
  0x33   : > { %576 = sbr.rel (%p3744_p3) target bundleno = 58 (0x3a), region = 76  ;;  %v577_v0 = vld [vmem:[#allocation3] sm:$0xff] (!%p3744_p3)  ;;  %vm579_vm0 = vcmask (!%p3744_p3), 261120   ;;  %v578_v1 = vld [vmem:[#allocation3 + $0x8] sm:$0xff] (!%p3744_p3) }
  0x34   : > { %s2870_s30 = sshll.u32 %s3408_s23, 5  ;;  %s556_s0 = scalar_lea.vmem %s3723_s7, %s3408_s23  ;;  %580 = vst.msk [vmem:[#allocation2] sm:$0xff] (!%p3744_p3), %vm579_vm0, %v577_v0  ;;  %581 = vst.msk [vmem:[#allocation2 + $0x8] sm:$0xff] (!%p3744_p3), %vm579_vm0, %v578_v1 }
  0x35   : > { %s3444_s15 = scalar_lea.vmem %s3724_s8, %s2870_s30  ;;  %s2873_s19 = sshll.u32 %s3408_s23, 6 }
  0x36   : > { %s3426_s18 = scalar_lea.vmem %s3742_s3, %s2870_s30  ;;  %s564_s3 = scalar_lea.vmem %s3725_s9, %s3408_s23 }
  0x37   : > { %s3431_s26 = scalar_lea.vmem %s3743_s4, %s2870_s30  ;;  %s572_s21 = scalar_lea.vmem %s3727_s11, %s3408_s23 }
  0x38   : > { %s3458_s25 = scalar_lea.vmem %s3726_s10, %s2873_s19 }
  0x3a PF: > { %vm586_vm1 = vcmask 261120   ;;  %v630_v16 = vld [vmem:[%s3426_s18] sm:$0xff]  ;;  %v631_v17 = vld [vmem:[%s3426_s18 + $0x8] sm:$0xff]  ;;  %v632_v18 = vld [vmem:[%s3426_s18 + $0x10] sm:$0xff]  ;;  %s3745_s30 = scalar_lea.vmem %s3717_s1, %s3408_s23  ;;  %s3746_s13 = scalar_lea.vmem %s3718_s2, %s3408_s23  ;;  %v3279_v38 = vmov 0.0   ;;  %vm3280_vm2 = vmmov 0  }
  0x3b   : > { %v3462_v2 = vld [vmem:[#allocation2] sm:$0xff]  ;;  %v3464_v3 = vld [vmem:[#allocation2 + $0x8] sm:$0xff]  ;;  %v3081_v19 = vpack.c.bf16 %v631_v17, %v630_v16  ;;  %v633_v20 = vld [vmem:[%s3426_s18 + $0x18] sm:$0xff]  ;;  %2961 = vmatprep.subr.mxu0 %v3279_v38  ;;  %2963 = vmatprep.mubr.msk.f32.mxu0 %vm3280_vm2, %v3279_v38  ;;  %s3281_s14 = smov 96   ;;  %s3282_s16 = smov 64   ;;  %vm718_vm3 = vcmask 64512  }
  0x3c   : > { %v587_v4 = vsel %vm586_vm1, %v3462_v2, 0.0  ;;  %v590_v5 = vsel %vm586_vm1, %v3464_v3, 0.0  ;;  %v3085_v21 = vpack.c.bf16 %v633_v20, %v632_v18  ;;  %v2820_v29 = vld [vmem:[%s3745_s30] ss:$0 sm:$0xff]  ;;  %s3283_s17 = smov 88   ;;  %s3284_s19 = smov 120  }
  0x3d   : > { %588 = vadd.xlane.f32.xlu0 %v587_v4  ;;  %3082 = vmatprep.subr.bf16.mxu1 %v3081_v19  ;;  %v2821_v31 = vld [vmem:[%s3746_s13] ss:$0 sm:$0xff]  ;;  %s3285_s20 = smov 56   ;;  %s3286_s24 = smov 80   ;;  %vm2554_vm4 = vcmask 523264  }
  0x3e   : > { %3084 = vmatpush3.bf16.msra.mxu1 %v3081_v19  ;;  %s3287_s27 = smov 112   ;;  %s3288_s4 = smov 48  }
  0x3f   : > { %3086 = vmatprep.subr.bf16.mxu1 %v3085_v21  ;;  %s3289_s29 = smov 72   ;;  %s3290_s30 = smov 104  }
  0x40   : > { %s3291_s18 = smov 40   ;;  %s3747_s13 = scalar_lea.vmem %s3721_s5, %s3408_s23 }
  0x41   : > { %591 = vadd.xlane.f32.xlu0 %v590_v5  ;;  %p2865_p4 = scmp.ne.s32.totalorder %s3366_s22, 1 }
  0x42   : > { %3088 = vmatpush3.bf16.msra.mxu1 %v3085_v21 }
  0x43   : > { %2951 = vmatprep.subr.mxu1 %v3279_v38 }
  0xca   : > { %v589_v6 = vpop.xlane.xlu0 %588 }
  0xcb   : > { %v594_v7 = vmul.f32 0.03125, %v589_v6 }
  0xcd   : > { %v596_v8 = vsub.f32 %v3462_v2, %v594_v7 }
  0xce   : > { %v592_v9 = vpop.xlane.xlu0 %591 }
  0xcf   : > { %v595_v10 = vmul.f32 0.03125, %v592_v9  ;;  %v598_v11 = vmul.f32 %v596_v8, %v596_v8 }
  0xd1   : > { %v597_v12 = vsub.f32 %v3464_v3, %v595_v10  ;;  %v600_v13 = vsel %vm586_vm1, %v598_v11, 0.0 }
  0xd2   : > { %601 = vadd.xlane.f32.xlu1 %v600_v13 }
  0xd3   : > { %v599_v14 = vmul.f32 %v597_v12, %v597_v12 }
  0xd5   : > { %v603_v15 = vsel %vm586_vm1, %v599_v14, 0.0 }
  0xd6   : > { %604 = vadd.xlane.f32.xlu1 %v603_v15 }
 0x15f   : > { %v602_v22 = vpop.xlane.xlu1 %601 }
 0x160   : > { %v606_v23 = vmul.f32 0.03125, %v602_v22 }
 0x162   : > { %v608_v24 = vadd.f32 1e-05, %v606_v23 }
 0x163   : > { %v605_v25 = vpop.xlane.xlu1 %604 }
 0x164   : > { %3162 = vrsqrt.f32 %v608_v24  ;;  %v607_v26 = vmul.f32 0.03125, %v605_v25 }
 0x166   : > { %v609_v27 = vadd.f32 1e-05, %v607_v26 }
 0x168   : > { %3164 = vrsqrt.f32 %v609_v27 }
 0x16e   : > { %v3163_v28 = vpop.eup %3162 }
 0x16f   : > { %v612_v30 = vmul.f32 %v3163_v28, %v596_v8 }
 0x171   : > { %v620_v32 = vmul.f32 %v2820_v29, %v612_v30 }
 0x172   : > { %v3165_v33 = vpop.eup %3164 }
 0x173   : > { %v613_v34 = vmul.f32 %v3165_v33, %v597_v12  ;;  %v628_v35 = vadd.f32 %v2821_v31, %v620_v32  ;;  %v1379_v33 = vld [vmem:[%s3431_s26 + $0x8] sm:$0xff] }
 0x175   : > { %v621_v36 = vmul.f32 %v2820_v29, %v613_v34  ;;  %2948 = vmatprep.mubr.msk.f32.mxu1 %vm586_vm1, %v628_v35  ;;  %v1046_v34 = vld [vmem:[%s3431_s26] sm:$0xff] }
 0x177   : > { %v629_v37 = vadd.f32 %v2821_v31, %v621_v36 }
 0x179   : > { %2949 = vmatmul.mubr.msk.f32.vlgmr.msra.gmra.mrb[0].mxu1 %vm586_vm1, %v629_v37 }
 0x17a   : > { %2953 = vmatprep.mubr.msk.f32.mxu1 %vm3280_vm2, %v3279_v38 }
 0x24c   : > { %v3496_v39 = vpop.f32.mrb[0].mxu1 }
 0x24d   : > { %794 = vrot.lane.b32.xlu1 %v3496_v39, %s3281_s14  ;;  %v3499_v40 = vpop.f32.mrb[1].mxu1 }
 0x24e   : > { %716 = vrot.lane.b32.xlu0 %v3499_v40, %s3281_s14 }
 0x252   : > { %966 = vrot.lane.b32.xlu0 %v3496_v39, %s3282_s16 }
 0x256   : > { %1127 = vrot.lane.b32.xlu0 %v3496_v39, %s3283_s17 }
 0x25a   : > { %1125 = vrot.lane.b32.xlu0 %v3496_v39, %s3284_s19 }
 0x2bf   : > { %v795_v42 = vpop.permute.xlu1 %794 }
 0x2c0   : > { %v717_v41 = vpop.permute.xlu0 %716 }
 0x2c1   : > { %2952 = vmatpush3.xpose.msk.msra.mxu1 %vm718_vm3, %v717_v41 }
 0x2c2   : > { %2956 = vmatprep.subr.mxu1 %v3279_v38 }
 0x2c4   : > { %2954 = vmatmul.mubr.msk.f32.vlgmr.msra.gmra.mrb[2].mxu1 %vm718_vm3, %v3499_v40  ;;  %v967_v43 = vpop.permute.xlu0 %966 }
 0x2c5   : > { %2957 = vmatpush3.xpose.msk.msra.mxu1 %vm718_vm3, %v795_v42  ;;  %2958 = vmatprep.mubr.msk.f32.mxu1 %vm3280_vm2, %v3279_v38 }
 0x2c6   : > { %2966 = vmatprep.subr.mxu1 %v3279_v38 }
 0x2c8   : > { %2959 = vmatmul.mubr.msk.f32.vlgmr.msra.gmra.mrb[4].mxu1 %vm718_vm3, %v3496_v39  ;;  %v1128_v52 = vpop.permute.xlu0 %1127 }
 0x2c9   : > { %2967 = vmatpush3.msra.mxu1 %v967_v43  ;;  %2968 = vmatprep.mubr.msk.f32.mxu1 %vm3280_vm2, %v3279_v38 }
 0x2ca   : > { %2976 = vmatprep.subr.mxu1 %v3279_v38 }
 0x2cc   : > { %v1126_v53 = vpop.permute.xlu0 %1125 }
 0x397   : > { %v789_v44 = vpop.f32.mrb[2].mxu1 }
 0x398   : > { %v870_v45 = vmul.f32 0.35355338, %v789_v44  ;;  %v2955_v46 = vpop.f32.mrb[3].mxu1 }
 0x39a   : > { %v872_v47 = vsel %vm718_vm3, %v870_v45, -inf }
 0x39b   : > { %873 = vmax.xlane.f32.xlu0 %v872_v47  ;;  %v866_v48 = vpop.f32.mrb[4].mxu1 }
 0x39c   : > { %v871_v49 = vmul.f32 0.35355338, %v866_v48  ;;  %v2960_v50 = vpop.f32.mrb[5].mxu1 }
 0x39e   : > { %v875_v51 = vsel %vm718_vm3, %v871_v49, -inf }
 0x39f   : > { %876 = vmax.xlane.f32.xlu1 %v875_v51 }
 0x3b0   : > { %890 = vrot.lane.b32.xlu1 %v3499_v40, %s3282_s16 }
 0x3b1   : > { %1049 = vrot.lane.b32.xlu0 %v3499_v40, %s3283_s17  ;;  %s3748_s17 = scalar_lea.vmem %s3722_s6, %s3408_s23 }
 0x3b4   : > { %1047 = vrot.lane.b32.xlu1 %v3499_v40, %s3284_s19 }
 0x3b5   : > { %1299 = vrot.lane.b32.xlu0 %v3496_v39, %s3285_s20 }
 0x3b9   : > { %1544 = vrot.lane.b32.xlu0 %v3499_v40, %s3286_s24 }
 0x3bd   : > { %1542 = vrot.lane.b32.xlu0 %v3499_v40, %s3287_s27 }
 0x3c1   : > { %1622 = vrot.lane.b32.xlu0 %v3496_v39, %s3286_s24 }
 0x3c5   : > { %1620 = vrot.lane.b32.xlu0 %v3496_v39, %s3287_s27 }
 0x428   : > { %v874_v54 = vpop.xlane.xlu0 %873 }
 0x429   : > { %v878_v55 = vsub.f32 %v870_v45, %v874_v54 }
 0x42b   : > { %v880_v56 = vmul.f32 1.442695, %v878_v55 }
 0x42c   : > { %v877_v57 = vpop.xlane.xlu1 %876  ;;  %v1050_v62 = vpop.permute.xlu0 %1049 }
 0x42d   : > { %3166 = vpow2.f32 %v880_v56  ;;  %v879_v58 = vsub.f32 %v871_v49, %v877_v57 }
 0x42f   : > { %v882_v59 = vmul.f32 1.442695, %v879_v58 }
 0x430   : > { %v891_v60 = vpop.permute.xlu1 %890  ;;  %v1300_v1 = vpop.permute.xlu0 %1299 }
 0x431   : > { %3168 = vpow2.f32 %v882_v59  ;;  %2962 = vmatpush3.msra.mxu0 %v891_v60 }
 0x432   : > { %2971 = vmatprep.subr.mxu0 %v3279_v38 }
 0x434   : > { %v1048_v0 = vpop.permute.xlu1 %1047  ;;  %v1545_v18 = vpop.permute.xlu0 %1544 }
 0x437   : > { %v3167_v61 = vpop.eup %3166 }
 0x438   : > { %2964 = vmatmul.mubr.msk.f32.vlgmr.msra.gmra.mrb[0].mxu0 %vm718_vm3, %v3167_v61  ;;  %v884_v16 = vsel %vm718_vm3, %v3167_v61, 0.0  ;;  %v1543_v19 = vpop.permute.xlu0 %1542 }
 0x439   : > { %2972 = vmatpush3.xpose.msk.msra.mxu0 %vm718_vm3, %v1050_v62  ;;  %2973 = vmatprep.mubr.msk.f32.mxu0 %vm3280_vm2, %v3279_v38 }
 0x43a   : > { %2981 = vmatprep.subr.mxu0 %v3279_v38 }
 0x43b   : > { %v3169_v63 = vpop.eup %3168 }
 0x43c   : > { %2969 = vmatmul.mubr.msk.f32.vlgmr.msra.gmra.mrb[6].mxu1 %vm718_vm3, %v3169_v63  ;;  %2974 = vmatmul.mubr.msk.f32.vlgmr.msra.gmra.mrb[2].mxu0 %vm718_vm3, %v1048_v0  ;;  %v887_v17 = vsel %vm718_vm3, %v3169_v63, 0.0  ;;  %v1623_v20 = vpop.permute.xlu0 %1622 }
 0x43d   : > { %2977 = vmatpush3.xpose.msk.msra.mxu1 %vm718_vm3, %v1128_v52  ;;  %2978 = vmatprep.mubr.msk.f32.mxu1 %vm3280_vm2, %v3279_v38 }
 0x43e   : > { %2986 = vmatprep.subr.mxu1 %v3279_v38  ;;  %2983 = vmatprep.mubr.msk.f32.mxu0 %vm3280_vm2, %v3279_v38 }
 0x440   : > { %2979 = vmatmul.mubr.msk.f32.vlgmr.msra.gmra.mrb[8].mxu1 %vm718_vm3, %v1126_v53  ;;  %v1621_v21 = vpop.permute.xlu0 %1620 }
 0x441   : > { %2987 = vmatpush3.msra.mxu1 %v1300_v1  ;;  %2988 = vmatprep.mubr.msk.f32.mxu1 %vm3280_vm2, %v3279_v38 }
 0x442   : > { %3001 = vmatprep.subr.mxu1 %v3279_v38 }
 0x50b   : > { %v3547_v4 = vpop.f32.mrb[0].mxu0 }
 0x50c   : > { %v2965_v5 = vpop.f32.mrb[1].mxu0 }
 0x50f   : > { %v3549_v6 = vpop.f32.mrb[6].mxu1  ;;  %v1121_v7 = vpop.f32.mrb[2].mxu0 }
 0x510   : > { %v1203_v8 = vmul.f32 0.35355338, %v1121_v7  ;;  %v2970_v9 = vpop.f32.mrb[7].mxu1  ;;  %v2975_v10 = vpop.f32.mrb[3].mxu0 }
 0x512   : > { %v1205_v11 = vsel %vm718_vm3, %v1203_v8, -inf }
 0x513   : > { %v1199_v12 = vpop.f32.mrb[8].mxu1  ;;  %1206 = vmax.xlane.f32.xlu0 %v1205_v11 }
 0x514   : > { %v1204_v13 = vmul.f32 0.35355338, %v1199_v12  ;;  %v2980_v14 = vpop.f32.mrb[9].mxu1 }
 0x516   : > { %v1208_v15 = vsel %vm718_vm3, %v1204_v13, -inf }
 0x517   : > { %1209 = vmax.xlane.f32.xlu1 %v1208_v15  ;;  %885 = vadd.xlane.f32.xlu0 %v884_v16 }
 0x51b   : > { %888 = vadd.xlane.f32.xlu0 %v887_v17 }
 0x528   : > { %1223 = vrot.lane.b32.xlu1 %v3499_v40, %s3285_s20 }
 0x5a0   : > { %v1207_v22 = vpop.xlane.xlu0 %1206 }
 0x5a1   : > { %v1211_v23 = vsub.f32 %v1203_v8, %v1207_v22 }
 0x5a3   : > { %v1213_v24 = vmul.f32 1.442695, %v1211_v23 }
 0x5a4   : > { %v1210_v25 = vpop.xlane.xlu1 %1209  ;;  %v886_v37 = vpop.xlane.xlu0 %885 }
 0x5a5   : > { %3170 = vpow2.f32 %v1213_v24  ;;  %v1212_v26 = vsub.f32 %v1204_v13, %v1210_v25  ;;  %v1874_v13 = vld [vmem:[%s3431_s26 + $0x10] sm:$0xff] }
 0x5a7   : > { %v1215_v27 = vmul.f32 1.442695, %v1212_v26 }
 0x5a8   : > { %v1224_v28 = vpop.permute.xlu1 %1223  ;;  %v889_v41 = vpop.xlane.xlu0 %888 }
 0x5a9   : > { %3172 = vpow2.f32 %v1215_v27  ;;  %2982 = vmatpush3.msra.mxu0 %v1224_v28 }
 0x5aa   : > { %2991 = vmatprep.subr.mxu0 %v1379_v33 }
 0x5af   : > { %v3171_v29 = vpop.eup %3170 }
 0x5b0   : > { %2984 = vmatmul.mubr.msk.f32.vlgmr.msra.gmra.mrb[4].mxu0 %vm718_vm3, %v3171_v29  ;;  %v1217_v30 = vsel %vm718_vm3, %v3171_v29, 0.0 }
 0x5b1   : > { %1218 = vadd.xlane.f32.xlu1 %v1217_v30  ;;  %2992 = vmatpush3.msra.mxu0 %v1379_v33 }
 0x5b2   : > { %2996 = vmatprep.subr.mxu0 %v1046_v34 }
 0x5b3   : > { %v3173_v31 = vpop.eup %3172 }
 0x5b4   : > { %2989 = vmatmul.mubr.msk.f32.vlgmr.msra.gmra.mrb[10].mxu1 %vm718_vm3, %v3173_v31  ;;  %v1220_v32 = vsel %vm718_vm3, %v3173_v31, 0.0 }
 0x5b5   : > { %3002 = vmatpush3.xpose.msk.msra.mxu1 %vm718_vm3, %v1545_v18  ;;  %1221 = vadd.xlane.f32.xlu0 %v1220_v32 }
 0x5b6   : > { %3003 = vmatprep.mubr.msk.f32.mxu1 %vm3280_vm2, %v3279_v38  ;;  %3006 = vmatprep.subr.mxu1 %v3279_v38 }
 0x5b8   : > { %3004 = vmatmul.mubr.msk.f32.vlgmr.msra.gmra.mrb[12].mxu1 %vm718_vm3, %v1543_v19 }
 0x5b9   : > { %3007 = vmatpush3.xpose.msk.msra.mxu1 %vm718_vm3, %v1623_v20  ;;  %3008 = vmatprep.mubr.msk.f32.mxu1 %vm3280_vm2, %v3279_v38 }
 0x5ba   : > { %3016 = vmatprep.subr.mxu1 %v3279_v38 }
 0x5bc   : > { %3009 = vmatmul.mubr.msk.f32.vlgmr.msra.gmra.mrb[14].mxu1 %vm718_vm3, %v1621_v21 }
 0x5bd   : > { %3018 = vmatprep.mubr.msk.f32.mxu1 %vm3280_vm2, %v3279_v38 }
 0x5c2   : > { %1794 = vrot.lane.b32.xlu1 %v3496_v39, %s3288_s4 }
 0x5c6   : > { %2038 = vrot.lane.b32.xlu1 %v3496_v39, %s3289_s29 }
 0x63e   : > { %v1219_v35 = vpop.xlane.xlu1 %1218 }
 0x63f   : > { %3174 = vrcp.f32 %v1219_v35 }
 0x640   : > { %3176 = vrcp.f32 %v886_v37 }
 0x642   : > { %v1795_v36 = vpop.permute.xlu1 %1794  ;;  %v1222_v42 = vpop.xlane.xlu0 %1221 }
 0x643   : > { %3017 = vmatpush3.msra.mxu1 %v1795_v36  ;;  %3178 = vrcp.f32 %v1222_v42 }
 0x644   : > { %3026 = vmatprep.subr.mxu1 %v3279_v38  ;;  %3180 = vrcp.f32 %v889_v41 }
 0x646   : > { %v2039_v16 = vpop.permute.xlu1 %2038 }
 0x649   : > { %v3175_v43 = vpop.eup %3174 }
 0x64a   : > { %v3177_v47 = vpop.eup %3176 }
 0x64b   : > { %v1043_v52 = vmul.f32 %v3177_v47, %v3547_v4  ;;  %v2290_v47 = vld [vmem:[%s3431_s26 + $0x18] sm:$0xff] }
 0x64d   : > { %v3179_v48 = vpop.eup %3178 }
 0x64e   : > { %v3181_v56 = vpop.eup %3180 }
 0x64f   : > { %v1045_v59 = vmul.f32 %v3181_v56, %v3549_v6 }
 0x683   : > { %v1295_v44 = vpop.f32.mrb[4].mxu0 }
 0x684   : > { %v1376_v45 = vmul.f32 %v3175_v43, %v1295_v44  ;;  %v2985_v46 = vpop.f32.mrb[5].mxu0 }
 0x686   : > { %2993 = vmatprep.mubr.msk.f32.mxu0 %vm718_vm3, %v1376_v45 }
 0x687   : > { %v1371_v49 = vpop.f32.mrb[10].mxu1 }
 0x688   : > { %v1378_v50 = vmul.f32 %v3179_v48, %v1371_v49  ;;  %v2990_v51 = vpop.f32.mrb[11].mxu1 }
 0x68a   : > { %2994 = vmatmul.mubr.msk.f32.vlgmr.msra.gmra.mrb[6].mxu0 %vm718_vm3, %v1378_v50 }
 0x68b   : > { %2998 = vmatprep.mubr.msk.f32.mxu0 %vm718_vm3, %v1043_v52  ;;  %v1616_v53 = vpop.f32.mrb[12].mxu1  ;;  %2997 = vmatpush3.msra.mxu0 %v1046_v34 }
 0x68c   : > { %v1698_v54 = vmul.f32 0.35355338, %v1616_v53  ;;  %v3005_v55 = vpop.f32.mrb[13].mxu1  ;;  %3011 = vmatprep.subr.mxu0 %v3279_v38 }
 0x68e   : > { %v1700_v57 = vsel %vm718_vm3, %v1698_v54, -inf }
 0x68f   : > { %1701 = vmax.xlane.f32.xlu0 %v1700_v57  ;;  %v1694_v58 = vpop.f32.mrb[14].mxu1 }
 0x690   : > { %v1699_v60 = vmul.f32 0.35355338, %v1694_v58  ;;  %v3010_v61 = vpop.f32.mrb[15].mxu1 }
 0x692   : > { %2999 = vmatmul.mubr.msk.f32.vlgmr.msra.gmra.mrb[6].mxu0 %vm718_vm3, %v1045_v59  ;;  %v1703_v62 = vsel %vm718_vm3, %v1699_v60, -inf  ;;  %v2856_v59 = vld [vmem:[%s3747_s13] ss:$0 sm:$0xff] }
 0x693   : > { %1704 = vmax.xlane.f32.xlu0 %v1703_v62  ;;  %3013 = vmatprep.mubr.msk.f32.mxu0 %vm3280_vm2, %v3279_v38 }
 0x6a9   : > { %1718 = vrot.lane.b32.xlu0 %v3499_v40, %s3288_s4 }
 0x6ad   : > { %1960 = vrot.lane.b32.xlu0 %v3499_v40, %s3289_s29 }
 0x71c   : > { %v1702_v63 = vpop.xlane.xlu0 %1701 }
 0x71d   : > { %v1706_v0 = vsub.f32 %v1698_v54, %v1702_v63 }
 0x71f   : > { %v1708_v1 = vmul.f32 1.442695, %v1706_v0 }
 0x720   : > { %v1705_v4 = vpop.xlane.xlu0 %1704 }
 0x721   : > { %3182 = vpow2.f32 %v1708_v1  ;;  %v1707_v5 = vsub.f32 %v1699_v60, %v1705_v4 }
 0x723   : > { %v1710_v6 = vmul.f32 1.442695, %v1707_v5 }
 0x724   : > { %v1719_v7 = vpop.permute.xlu0 %1718 }
 0x725   : > { %3184 = vpow2.f32 %v1710_v6  ;;  %3012 = vmatpush3.msra.mxu0 %v1719_v7 }
 0x726   : > { %3021 = vmatprep.subr.mxu0 %v1874_v13 }
 0x728   : > { %v1961_v11 = vpop.permute.xlu0 %1960 }
 0x72b   : > { %v3183_v8 = vpop.eup %3182 }
 0x72c   : > { %3014 = vmatmul.mubr.msk.f32.vlgmr.msra.gmra.mrb[8].mxu0 %vm718_vm3, %v3183_v8  ;;  %v1712_v9 = vsel %vm718_vm3, %v3183_v8, 0.0 }
 0x72d   : > { %1713 = vadd.xlane.f32.xlu0 %v1712_v9  ;;  %3022 = vmatpush3.msra.mxu0 %v1874_v13  ;;  %v2429_v13 = vld [vmem:[%s3444_s15] sm:$0xff] }
 0x72e   : > { %3031 = vmatprep.subr.mxu0 %v3279_v38 }
 0x72f   : > { %v3185_v10 = vpop.eup %3184 }
 0x730   : > { %3019 = vmatmul.mubr.msk.f32.vlgmr.msra.gmra.mrb[16].mxu1 %vm718_vm3, %v3185_v10  ;;  %v1715_v12 = vsel %vm718_vm3, %v3185_v10, 0.0 }
 0x731   : > { %3027 = vmatpush3.xpose.msk.msra.mxu1 %vm718_vm3, %v1961_v11  ;;  %1716 = vadd.xlane.f32.xlu1 %v1715_v12 }
 0x732   : > { %3028 = vmatprep.mubr.msk.f32.mxu1 %vm3280_vm2, %v3279_v38  ;;  %3036 = vmatprep.subr.mxu1 %v3279_v38 }
 0x742   : > { %2036 = vrot.lane.b32.xlu1 %v3496_v39, %s3290_s30 }
 0x743   : > { %1958 = vrot.lane.b32.xlu0 %v3499_v40, %s3290_s30 }
 0x7ba   : > { %v1714_v14 = vpop.xlane.xlu0 %1713 }
 0x7bb   : > { %3186 = vrcp.f32 %v1714_v14  ;;  %v2430_v14 = vld [vmem:[%s3444_s15 + $0x8] sm:$0xff] }
 0x7be   : > { %v1959_v15 = vpop.permute.xlu0 %1958  ;;  %v1717_v17 = vpop.xlane.xlu1 %1716 }
 0x7bf   : > { %3029 = vmatmul.mubr.msk.f32.vlgmr.msra.gmra.mrb[18].mxu1 %vm718_vm3, %v1959_v15  ;;  %3188 = vrcp.f32 %v1717_v17  ;;  %v3089_v15 = vpack.c.bf16 %v2430_v14, %v2429_v13  ;;  %v2432_v17 = vld [vmem:[%s3444_s15 + $0x18] sm:$0xff] }
 0x7c0   : > { %3038 = vmatprep.mubr.msk.f32.mxu1 %vm3280_vm2, %v3279_v38 }
 0x7c2   : > { %v2037_v26 = vpop.permute.xlu1 %2036 }
 0x7c5   : > { %v3187_v18 = vpop.eup %3186 }
 0x7c9   : > { %v3189_v22 = vpop.eup %3188 }
 0x7ff   : > { %v1790_v19 = vpop.f32.mrb[8].mxu0 }
 0x800   : > { %v1871_v20 = vmul.f32 %v3187_v18, %v1790_v19  ;;  %v3015_v21 = vpop.f32.mrb[9].mxu0 }
 0x802   : > { %3023 = vmatprep.mubr.msk.f32.mxu0 %vm718_vm3, %v1871_v20 }
 0x803   : > { %v1866_v23 = vpop.f32.mrb[16].mxu1 }
 0x804   : > { %v1873_v24 = vmul.f32 %v3189_v22, %v1866_v23  ;;  %v3020_v25 = vpop.f32.mrb[17].mxu1 }
 0x806   : > { %3024 = vmatmul.mubr.msk.f32.vlgmr.msra.gmra.mrb[6].mxu0 %vm718_vm3, %v1873_v24 }
 0x807   : > { %3032 = vmatpush3.xpose.msk.msra.mxu0 %vm718_vm3, %v2039_v16  ;;  %3033 = vmatprep.mubr.msk.f32.mxu0 %vm3280_vm2, %v3279_v38  ;;  %v2431_v16 = vld [vmem:[%s3444_s15 + $0x10] sm:$0xff] }
 0x808   : > { %3041 = vmatprep.subr.mxu0 %v3279_v38  ;;  %v3093_v18 = vpack.c.bf16 %v2432_v17, %v2431_v16 }
 0x80a   : > { %3034 = vmatmul.mubr.msk.f32.vlgmr.msra.gmra.mrb[10].mxu0 %vm718_vm3, %v2037_v26  ;;  %v2857_v26 = vld [vmem:[%s3748_s17] ss:$0 sm:$0xff] }
 0x80b   : > { %3043 = vmatprep.mubr.msk.f32.mxu0 %vm3280_vm2, %v3279_v38 }
 0x892   : > { %v2032_v27 = vpop.f32.mrb[18].mxu1 }
 0x893   : > { %v2114_v28 = vmul.f32 0.35355338, %v2032_v27  ;;  %v3030_v29 = vpop.f32.mrb[19].mxu1 }
 0x895   : > { %v2116_v30 = vsel %vm718_vm3, %v2114_v28, -inf }
 0x896   : > { %2117 = vmax.xlane.f32.xlu0 %v2116_v30 }
 0x8ac   : > { %2134 = vrot.lane.b32.xlu0 %v3499_v40, %s3291_s18 }
 0x8dd   : > { %v2110_v31 = vpop.f32.mrb[10].mxu0 }
 0x8de   : > { %v2115_v32 = vmul.f32 0.35355338, %v2110_v31  ;;  %v3035_v33 = vpop.f32.mrb[11].mxu0 }
 0x8e0   : > { %v2119_v34 = vsel %vm718_vm3, %v2115_v32, -inf }
 0x8e1   : > { %2120 = vmax.xlane.f32.xlu1 %v2119_v34 }
 0x8f2   : > { %2210 = vrot.lane.b32.xlu1 %v3496_v39, %s3291_s18 }
 0x923   : > { %v2118_v35 = vpop.xlane.xlu0 %2117 }
 0x924   : > { %v2122_v36 = vsub.f32 %v2114_v28, %v2118_v35  ;;  %v2858_v28 = vld [vmem:[%s556_s0] ss:$0 sm:$0xff] }
 0x925   : > { %v2539_v35 = vld [vmem:[%s3458_s25] sm:$0xff] }
 0x926   : > { %v2124_v38 = vmul.f32 1.442695, %v2122_v36  ;;  %v2540_v36 = vld [vmem:[%s3458_s25 + $0x8] sm:$0xff] }
 0x927   : > { %v2135_v37 = vpop.permute.xlu0 %2134 }
 0x928   : > { %3190 = vpow2.f32 %v2124_v38  ;;  %3037 = vmatpush3.msra.mxu1 %v2135_v37  ;;  %v3097_v38 = vpack.c.bf16 %v2540_v36, %v2539_v35  ;;  %v2541_v37 = vld [vmem:[%s3458_s25 + $0x10] sm:$0xff] }
 0x929   : > { %3090 = vmatprep.subr.bf16.mxu1 %v3089_v15 }
 0x932   : > { %v3191_v41 = vpop.eup %3190 }
 0x933   : > { %3039 = vmatmul.mubr.msk.f32.vlgmr.msra.gmra.mrb[20].mxu1 %vm718_vm3, %v3191_v41  ;;  %v2128_v40 = vsel %vm718_vm3, %v3191_v41, 0.0  ;;  %v2542_v41 = vld [vmem:[%s3458_s25 + $0x18] sm:$0xff] }
 0x934   : > { %2129 = vadd.xlane.f32.xlu0 %v2128_v40  ;;  %3092 = vmatpush3.bf16.msra.mxu1 %v3089_v15  ;;  %v3101_v40 = vpack.c.bf16 %v2542_v41, %v2541_v37 }
 0x935   : > { %3094 = vmatprep.subr.bf16.mxu1 %v3093_v18 }
 0x938   : > { %3096 = vmatpush3.bf16.msra.mxu1 %v3093_v18 }
 0x96e   : > { %v2121_v42 = vpop.xlane.xlu1 %2120 }
 0x96f   : > { %v2123_v43 = vsub.f32 %v2115_v32, %v2121_v42  ;;  %v2543_v42 = vld [vmem:[%s3458_s25 + $0x20] sm:$0xff] }
 0x971   : > { %v2126_v44 = vmul.f32 1.442695, %v2123_v43  ;;  %v2544_v43 = vld [vmem:[%s3458_s25 + $0x28] sm:$0xff] }
 0x972   : > { %v2211_v45 = vpop.permute.xlu1 %2210 }
 0x973   : > { %3192 = vpow2.f32 %v2126_v44  ;;  %3042 = vmatpush3.msra.mxu0 %v2211_v45  ;;  %v3105_v44 = vpack.c.bf16 %v2544_v43, %v2543_v42  ;;  %v2545_v45 = vld [vmem:[%s3458_s25 + $0x30] sm:$0xff] }
 0x974   : > { %3046 = vmatprep.subr.mxu0 %v2290_v47 }
 0x97d   : > { %v3193_v39 = vpop.eup %3192 }
 0x97e   : > { %3044 = vmatmul.mubr.msk.f32.vlgmr.msra.gmra.mrb[12].mxu0 %vm718_vm3, %v3193_v39  ;;  %v2131_v46 = vsel %vm718_vm3, %v3193_v39, 0.0  ;;  %v2546_v39 = vld [vmem:[%s3458_s25 + $0x38] sm:$0xff] }
 0x97f   : > { %2132 = vadd.xlane.f32.xlu1 %v2131_v46  ;;  %3047 = vmatpush3.msra.mxu0 %v2290_v47  ;;  %v3109_v46 = vpack.c.bf16 %v2546_v39, %v2545_v45  ;;  %v2859_v47 = vld [vmem:[%s564_s3] ss:$0 sm:$0xff] }
 0x980   : > { %3098 = vmatprep.subr.bf16.mxu0 %v3097_v38 }
 0x9c1   : > { %v2130_v48 = vpop.xlane.xlu0 %2129 }
 0x9c2   : > { %3194 = vrcp.f32 %v2130_v48 }
 0x9cc   : > { %v3195_v49 = vpop.eup %3194 }
 0xa06   : > { %v2206_v50 = vpop.f32.mrb[20].mxu1 }
 0xa07   : > { %v2287_v51 = vmul.f32 %v3195_v49, %v2206_v50  ;;  %v3040_v52 = vpop.f32.mrb[21].mxu1 }
 0xa09   : > { %3048 = vmatprep.mubr.msk.f32.mxu0 %vm718_vm3, %v2287_v51 }
 0xa0c   : > { %v2133_v53 = vpop.xlane.xlu1 %2132 }
 0xa0d   : > { %3196 = vrcp.f32 %v2133_v53 }
 0xa17   : > { %v3197_v54 = vpop.eup %3196 }
 0xa51   : > { %v2282_v55 = vpop.f32.mrb[12].mxu0 }
 0xa52   : > { %v2289_v56 = vmul.f32 %v3197_v54, %v2282_v55  ;;  %v3045_v57 = vpop.f32.mrb[13].mxu0 }
 0xa54   : > { %3049 = vmatmul.mubr.msk.f32.vlgmr.msra.gmra.mrb[6].mxu0 %vm718_vm3, %v2289_v56 }
 0xa55   : > { %3100 = vmatpush3.bf16.msra.mxu0 %v3097_v38 }
 0xa56   : > { %3102 = vmatprep.subr.bf16.mxu0 %v3101_v40 }
 0xa59   : > { %3104 = vmatpush3.bf16.msra.mxu0 %v3101_v40 }
 0xa5a   : > { %3106 = vmatprep.subr.bf16.mxu0 %v3105_v44 }
 0xa5d   : > { %3108 = vmatpush3.bf16.msra.mxu0 %v3105_v44 }
 0xa5e   : > { %3110 = vmatprep.subr.bf16.mxu0 %v3109_v46 }
 0xa61   : > { %3112 = vmatpush3.bf16.msra.mxu0 %v3109_v46 }
 0xb27   : > { %v3050_v58 = vpop.f32.mrb[6].mxu0 }
 0xb28   : > { %v2363_v60 = vpop.f32.mrb[7].mxu0  ;;  %v2375_v61 = vadd.f32 %v3050_v58, %v3464_v3 }
 0xb29   : > { %v2374_v62 = vadd.f32 %v2363_v60, %v3462_v2 }
 0xb2a   : > { %v3639_v0 = vadd.f32 %v2856_v59, %v2375_v61 }
 0xb2b   : > { %v3637_v63 = vadd.f32 %v2856_v59, %v2374_v62 }
 0xb2c   : > { %v2390_v4 = vsel %vm586_vm1, %v3639_v0, 0.0 }
 0xb2d   : > { %v2387_v1 = vsel %vm586_vm1, %v3637_v63, 0.0 }
 0xb2e   : > { %2388 = vadd.xlane.f32.xlu0 %v2387_v1 }
 0xb32   : > { %2391 = vadd.xlane.f32.xlu0 %v2390_v4 }
 0xbbb   : > { %v2389_v5 = vpop.xlane.xlu0 %2388 }
 0xbbc   : > { %v2393_v6 = vmul.f32 0.03125, %v2389_v5 }
 0xbbe   : > { %v2395_v3 = vsub.f32 %v3637_v63, %v2393_v6 }
 0xbbf   : > { %v2392_v2 = vpop.xlane.xlu0 %2391 }
 0xbc0   : > { %v2394_v7 = vmul.f32 0.03125, %v2392_v2  ;;  %v2397_v8 = vmul.f32 %v2395_v3, %v2395_v3 }
 0xbc2   : > { %v2396_v9 = vsub.f32 %v3639_v0, %v2394_v7  ;;  %v2399_v10 = vsel %vm586_vm1, %v2397_v8, 0.0  ;;  %v2862_v8 = vld [vmem:[%s572_s21] ss:$0 sm:$0xff] }
 0xbc3   : > { %2400 = vadd.xlane.f32.xlu1 %v2399_v10 }
 0xbc4   : > { %v2398_v11 = vmul.f32 %v2396_v9, %v2396_v9 }
 0xbc6   : > { %v2402_v12 = vsel %vm586_vm1, %v2398_v11, 0.0 }
 0xbc7   : > { %2403 = vadd.xlane.f32.xlu0 %v2402_v12 }
 0xc50   : > { %v2401_v19 = vpop.xlane.xlu1 %2400 }
 0xc51   : > { %v2405_v20 = vmul.f32 0.03125, %v2401_v19 }
 0xc53   : > { %v2407_v21 = vadd.f32 1e-05, %v2405_v20 }
 0xc54   : > { %v2404_v22 = vpop.xlane.xlu0 %2403 }
 0xc55   : > { %3198 = vrsqrt.f32 %v2407_v21  ;;  %v2406_v23 = vmul.f32 0.03125, %v2404_v22 }
 0xc57   : > { %v2408_v24 = vadd.f32 1e-05, %v2406_v23 }
 0xc59   : > { %3200 = vrsqrt.f32 %v2408_v24 }
 0xc5f   : > { %v3199_v25 = vpop.eup %3198 }
 0xc60   : > { %v2411_v27 = vmul.f32 %v3199_v25, %v2395_v3 }
 0xc62   : > { %v2419_v29 = vmul.f32 %v2857_v26, %v2411_v27 }
 0xc63   : > { %v3201_v30 = vpop.eup %3200 }
 0xc64   : > { %v2412_v31 = vmul.f32 %v3201_v30, %v2396_v9  ;;  %v2427_v32 = vadd.f32 %v2858_v28, %v2419_v29 }
 0xc66   : > { %v2420_v33 = vmul.f32 %v2857_v26, %v2412_v31  ;;  %3059 = vmatprep.mubr.msk.f32.mxu1 %vm586_vm1, %v2427_v32 }
 0xc68   : > { %v2428_v34 = vadd.f32 %v2858_v28, %v2420_v33 }
 0xc6a   : > { %3060 = vmatmul.mubr.msk.f32.vlgmr.msra.gmra.mrb[22].mxu1 %vm586_vm1, %v2428_v34 }
 0xd3d   : > { %v3061_v48 = vpop.f32.mrb[22].mxu1 }
 0xd3e   : > { %v2518_v49 = vadd.f32 %v3061_v48, %v2859_v47  ;;  %v2512_v50 = vpop.f32.mrb[23].mxu1 }
 0xd3f   : > { %v2513_v51 = vadd.f32 %v2859_v47, %v2512_v50 }
 0xd40   : > { %v2524_v52 = vmul.f32 0.044715, %v2518_v49  ;;  %v2522_v3 = vmul.f32 0.5, %v2518_v49 }
 0xd41   : > { %v2523_v53 = vmul.f32 0.044715, %v2513_v51  ;;  %v2521_v5 = vmul.f32 0.5, %v2513_v51 }
 0xd42   : > { %v2526_v54 = vmul.f32 %v2524_v52, %v2518_v49 }
 0xd43   : > { %v2525_v55 = vmul.f32 %v2523_v53, %v2513_v51 }
 0xd44   : > { %v2528_v56 = vmul.f32 %v2526_v54, %v2518_v49 }
 0xd45   : > { %v2527_v57 = vmul.f32 %v2525_v55, %v2513_v51 }
 0xd46   : > { %v2530_v58 = vadd.f32 %v2528_v56, %v2518_v49 }
 0xd47   : > { %v2529_v59 = vadd.f32 %v2527_v57, %v2513_v51 }
 0xd48   : > { %v2532_v60 = vmul.f32 0.7978846, %v2530_v58 }
 0xd49   : > { %v2531_v61 = vmul.f32 0.7978846, %v2529_v59 }
 0xd4a   : > { %3202 = vtanh.f32 %v2532_v60 }
 0xd4b   : > { %3204 = vtanh.f32 %v2531_v61 }
 0xd54   : > { %v3203_v62 = vpop.eup %3202 }
 0xd55   : > { %v3205_v1 = vpop.eup %3204  ;;  %v2536_v4 = vadd.f32 1.0, %v3203_v62 }
 0xd56   : > { %v2535_v6 = vadd.f32 1.0, %v3205_v1 }
 0xd57   : > { %v2538_v7 = vmul.f32 %v2536_v4, %v2522_v3 }
 0xd58   : > { %v2537_v2 = vmul.f32 %v2535_v6, %v2521_v5 }
 0xd5a   : > { %3078 = vmatprep.mubr.msk.f32.mxu0 %vm2554_vm4, %v2537_v2 }
 0xd5b   : > { %3079 = vmatmul.mubr.msk.f32.vlgmr.msra.gmra.mrb[14].mxu0 %vm2554_vm4, %v2538_v7 }
 0xe2e   : > { %v3080_v9 = vpop.f32.mrb[14].mxu0  ;;  %2643 = sbr.rel (%p2865_p4) target bundleno = 3637 (0xe35), region = 80 }
 0xe2f   : > { %v2633_v10 = vadd.f32 %v3080_v9, %v2862_v8  ;;  %v2627_v11 = vpop.f32.mrb[15].mxu0 }
 0xe30   : > { %v2628_v12 = vadd.f32 %v2862_v8, %v2627_v11 }
 0xe31   : > { %v2637_v13 = vadd.f32 %v2633_v10, %v3639_v0 }
 0xe32   : > { %v2636_v14 = vadd.f32 %v2628_v12, %v3637_v63 }
 0xe33   : > { %2639 = vst.msk [vmem:[#allocation2 + $0x8] sm:$0xff] %vm586_vm1, %v2637_v13  ;;  %2645 = vst.msk [vmem:[#allocation6 + $0x8] sm:$0xff] (!%p2865_p4), %vm586_vm1, %v2637_v13 }
 0xe34   : > { %2638 = vst.msk [vmem:[#allocation2] sm:$0xff] %vm586_vm1, %v2636_v14  ;;  %2644 = vst.msk [vmem:[#allocation6] sm:$0xff] (!%p2865_p4), %vm586_vm1, %v2636_v14 }
 0xe35 PF: > { %p3133_p6 = scmp.eq.s32.totalorder %s3366_s22, 1  ;;  %s3292_s21 = smov [#allocation6]  }
 0xe36   : > { %s2652_s23 = sshll.u32 %s3292_s21, 4  ;;  %s2653_s23 = int_to_ptr.vmem [resolvable:$true] %s2652_s23 }
 0xe37   : > { %s3234_s24 = scalar_lea.vmem %s2653_s23, 256  ;;  %p3241_p13 = scmp.lt.s32.totalorder %s2653_s23, %s2653_s23 }
 0xe38   : > { %p3235_p10 = scmp.ne.s32.totalorder %s2653_s23, %s3234_s24  ;;  %p3242_p0 = scmp.lt.s32.totalorder %s3234_s24, %s3234_s24 }
 0xe3a   : > { %p3236_p11 = pnand %p3235_p10, %p3133_p6  ;;  %p3243_p1 = por %p3242_p0, %p3241_p13 }
 0xe3c   : > { %p3237_p12 = pneg %p3236_p11 }
 0xe3e   : > { %p3244_p5 = pnand %p3243_p1, %p3237_p12 }
 0xe40   : > { %3247 = shalt.err (!%p3244_p5)
}
 0xe41   : > { %s3248_s29 = scalar_lea.hbm %s3728_s12, 256 }
 0xe42   : > { %p3249_p7 = scmp.ne.s32.totalorder %s3728_s12, %s3248_s29  ;;  %p3254_p2 = scmp.lt.u32.totalorder %s3248_s29, %s3728_s12 }
 0xe44   : > { %p3250_p9 = pnand %p3249_p7, %p3133_p6 }
 0xe46   : > { %p3251_p8 = pneg %p3250_p9 }
 0xe48   : > { %p3256_p3 = pnand %p3254_p2, %p3251_p8 }
 0xe4a   : > { %3259 = shalt.err (!%p3256_p3)
}
 0xe4b   : > { %s3293_s13 = smov 128   ;;  %s3294_s14 = smov 8  }
 0xe4c   : > { %3124 = dma.vmem_to_hbm [thread:$0]  (%p3133_p6), %s2653_s23, 256, %s3728_s12, [#allocation5], %s3293_s13, %s3293_s13, %s3294_s14  }
 0xe4d   : > { %3269 = dma.done.wait (%p3133_p6), [#allocation5], 256  }
 0xe4e   : > { %3271 = vsyncadd (%p3133_p6), [#allocation5], 4294967040 }
 0xe4f PF: > { %s3749_s15 = sld [smem:[#allocation9_spill]] }
 0xe55   : > { %s24_s21 = sadd.s32 1, %s3749_s15  }
 0xe56   : > { %p21_p4 = scmp.ge.s32.totalorder %s24_s21, 4  }
 0xe58   :  { %23 = sbr.rel (!%p21_p4) target bundleno = 6 (0x6), region = 138 }
 0xe5f   :  { %2668 = vsyncpa [#allocation4], 1 }
 0xe60   :  { %2670 = vsyncpa [#allocation4 + $0x1], 1 }
 0xe61   :  { %2671 = vsyncpa [#allocation5], 1 }
 0xe62   :  { %2673 = vsyncpa [#allocation5 + $0x1], 1 }

</bundles_post_ra>
